<compile_context>
chip_gen: v7x
topology: tpu7x:2x2x1
jax: 0.10.0
libtpu: 0.0.40
codegen_flags: <defaults>
</compile_context>

<pallas_src>
import functools

import numpy as np

import jax
import jax.numpy as jnp
from jax import lax
from jax.experimental import pallas as pl
from jax.experimental.pallas import tpu as pltpu


def _upsample_conv_kernel(xp_ref, m_ref, r_ref, bias_ref, o_ref, *, H):
    # xp_ref:   VMEM (1, H+2, Cin*W)        row-padded, channel-lane-packed x
    # m_ref:    VMEM (2, 2, Cin*W, Cout*2W) folded weight + col-interleave mats
    # r_ref:    VMEM (2, 2H, H)             row-parity interleave (0/1) mats
    # bias_ref: VMEM (1, Cout*2W)           bias broadcast along output cols
    # o_ref:    VMEM (1, 2H, Cout*2W)       lane-dense output slab
    f32 = jnp.float32

    rows0 = xp_ref[0, 0:H, :]          # original rows r-1   (top halo row = 0)
    rows1 = xp_ref[0, 1:H + 1, :]      # original rows r
    rows2 = xp_ref[0, 2:H + 2, :]      # original rows r+1   (bottom halo = 0)

    # Per-output-row-parity planes at original row resolution.  Each dot does
    # the per-channel 2x2-tap weighting, the channel reduction and the column
    # interleave in one (H, Cin*W) @ (Cin*W, Cout*2W) MXU matmul.
    y0 = (jnp.dot(rows0, m_ref[0, 0], preferred_element_type=f32)
          + jnp.dot(rows1, m_ref[0, 1], preferred_element_type=f32))
    y1 = (jnp.dot(rows1, m_ref[1, 0], preferred_element_type=f32)
          + jnp.dot(rows2, m_ref[1, 1], preferred_element_type=f32))

    # Row interleave: output row 2r+ph takes row r of y_ph.  Bias is a
    # (1, Cout*2W) sublane broadcast.
    y = (jnp.dot(r_ref[0], y0, preferred_element_type=f32)
         + jnp.dot(r_ref[1], y1, preferred_element_type=f32)
         + bias_ref[...])

    o_ref[0] = y.astype(o_ref.dtype)


def _fold_weights(weight):
    """weight (Cout, Cin, 3, 3) OIHW -> weff (2, 2, 2, 2, Cout, Cin) f32.

    weff[ph, pw, a, b] is the 2x2-conv tap (row offset a, col offset b) for the
    output parity (ph, pw): sums of the original 3x3 taps that land on the same
    original-resolution pixel after the nearest-x2 upsample.
    """
    Cout, Cin = weight.shape[0], weight.shape[1]
    w = weight.astype(jnp.float32)
    groups = {0: ((0,), (1, 2)), 1: ((0, 1), (2,))}
    blocks = []
    for ph in (0, 1):
        for pw in (0, 1):
            for a in (0, 1):
                for b in (0, 1):
                    acc = jnp.zeros((Cout, Cin), jnp.float32)
                    for kh in groups[ph][a]:
                        for kw in groups[pw][b]:
                            acc = acc + w[:, :, kh, kw]
                    blocks.append(acc)
    return jnp.stack(blocks, 0).reshape(2, 2, 2, 2, Cout, Cin)


def _build_col_matrices(weff, Cin, Cout, W):
    """(2, 2, Cin*W, Cout*2W) matrices: channel reduce + column interleave.

    M[ph, a, ci*W + u, co*2W + o] contributes x[ci, ., u] (row offset a+ph-1)
    to output channel co, output column o = 2c + pw; column boundary handling
    (zero halo) is encoded by simply omitting out-of-range taps.
    """
    S = np.zeros((2, 2, W, 2 * W), np.float32)          # [pw, b, u, o]
    for pw in (0, 1):
        for b in (0, 1):
            for o in range(2 * W):
                if o % 2 != pw:
                    continue
                u = o // 2 + b + pw - 1
                if 0 <= u < W:
                    S[pw, b, u, o] = 1.0
    M = jnp.einsum('hwabOI,wbuo->haIuOo', weff, jnp.asarray(S))
    return M.reshape(2, 2, Cin * W, Cout * 2 * W)


def _build_row_matrices(H):
    """(2, 2H, H) 0/1 matrices: output row 2r+ph <- parity-ph plane row r."""
    R = np.zeros((2, 2 * H, H), np.float32)
    R[0, np.arange(0, 2 * H, 2), np.arange(H)] = 1.0
    R[1, np.arange(1, 2 * H, 2), np.arange(H)] = 1.0
    return jnp.asarray(R)


def upsample_forward(x_nchw, weight, bias, *, use_conv=True):
    """x_nchw: (N, C, H, W); weight: (Cout, C, 3, 3); bias: (Cout,)."""
    N, C, H, W = x_nchw.shape
    if not use_conv:
        return jnp.repeat(jnp.repeat(x_nchw, 2, axis=2), 2, axis=3)

    Cout = weight.shape[0]

    # Constants built once in the wrapper (nothing recomputed per grid step).
    weff = _fold_weights(weight)
    M = _build_col_matrices(weff, C, Cout, W)            # (2, 2, C*W, Cout*2W)
    R = _build_row_matrices(H)                           # (2, 2H, H)
    bias_row = jnp.repeat(bias.astype(jnp.float32), 2 * W)[None, :]  # (1, Cout*2W)

    # Channel-lane-packed, row-padded input: xp[n, r+1, ci*W + u] = x[n, ci, r, u].
    xp = jnp.transpose(x_nchw, (0, 2, 1, 3)).reshape(N, H, C * W)
    xp = jnp.pad(xp.astype(jnp.float32), ((0, 0), (1, 1), (0, 0)))

    kernel = functools.partial(_upsample_conv_kernel, H=H)

    out = pl.pallas_call(
        kernel,
        out_shape=jax.ShapeDtypeStruct((N, 2 * H, Cout * 2 * W), x_nchw.dtype),
        grid_spec=pltpu.PrefetchScalarGridSpec(
            num_scalar_prefetch=0,
            grid=(N,),
            in_specs=[
                pl.BlockSpec((1, H + 2, C * W), lambda n: (n, 0, 0)),
                pl.BlockSpec((2, 2, C * W, Cout * 2 * W),
                             lambda n: (0, 0, 0, 0)),
                pl.BlockSpec((2, 2 * H, H), lambda n: (0, 0, 0)),
                pl.BlockSpec((1, Cout * 2 * W), lambda n: (0, 0)),
            ],
            out_specs=pl.BlockSpec((1, 2 * H, Cout * 2 * W),
                                   lambda n: (n, 0, 0)),
        ),
        compiler_params=pltpu.CompilerParams(
            # Batch axis is independent: v7x's two TensorCores each take one
            # image; on v5e/v6e (single TC) it is just a 2-step loop.
            dimension_semantics=("parallel",)),
    )(xp, M, R, bias_row)

    # Layout plumbing back to NCHW: (N, 2H, Cout*2W) -> (N, Cout, 2H, 2W).
    out = out.reshape(N, 2 * H, Cout, 2 * W)
    return jnp.transpose(out, (0, 2, 1, 3))


def _reference(x_nchw, weight, bias):
    x_up = jnp.repeat(jnp.repeat(x_nchw, 2, axis=2), 2, axis=3)
    y = lax.conv_general_dilated(
        x_up, weight, window_strides=(1, 1), padding=((1, 1), (1, 1)),
        dimension_numbers=("NCHW", "OIHW", "NCHW"),
    )
    return y + bias[None, :, None, None]


if __name__ == "__main__":
    # Module config: channels=4, use_conv=True, dims=2, out_channels=channels
    N, C, H, W = 2, 4, 16, 16
    Cout = C

    key = jax.random.PRNGKey(0)
    kx, kw_, kb = jax.random.split(key, 3)

    x = jax.random.normal(kx, (N, C, H, W), dtype=jnp.float32)
    # Deterministic synthetic Conv2d(C, Cout, 3, padding=1) parameters
    fan_in = C * 3 * 3
    bound = 1.0 / (fan_in ** 0.5)
    weight = jax.random.uniform(kw_, (Cout, C, 3, 3), jnp.float32, -bound, bound)
    bias = jax.random.uniform(kb, (Cout,), jnp.float32, -bound, bound)

    out = upsample_forward(x, weight, bias, use_conv=True)
    out = jax.block_until_ready(out)

    assert out.shape == (N, Cout, 2 * H, 2 * W), out.shape

    ref = _reference(x, weight, bias)
    err = float(jnp.max(jnp.abs(out - ref)))
    assert jnp.allclose(out, ref, rtol=2e-3, atol=2e-3), err

    print("KERNEL_OK")
</pallas_src>

<mosaic_0001>
module attributes {stable_mosaic.version = 11 : i64} {
  func.func @_upsample_conv_kernel(%arg0: i32, %arg1: memref<1x18x64xf32, #tpu.memory_space<vmem>>, %arg2: memref<2x2x64x128xf32, #tpu.memory_space<vmem>>, %arg3: memref<2x32x16xf32, #tpu.memory_space<vmem>>, %arg4: memref<1x128xf32, #tpu.memory_space<vmem>>, %arg5: memref<1x32x128xf32, #tpu.memory_space<vmem>>) attributes {dimension_semantics = [#tpu.dimension_semantics<parallel>], iteration_bounds = array<i64: 2>, scalar_prefetch = 0 : i64, scratch_operands = 0 : i64, tpu.core_type = #tpu.core_type<tc>, window_params = [{transform_indices = @transform_0, window_bounds = array<i64: 1, 18, 64>}, {pipeline_mode = #tpu.pipeline_mode<synchronous>, transform_indices = @transform_1, window_bounds = array<i64: 2, 2, 64, 128>}, {pipeline_mode = #tpu.pipeline_mode<synchronous>, transform_indices = @transform_2, window_bounds = array<i64: 2, 32, 16>}, {pipeline_mode = #tpu.pipeline_mode<synchronous>, transform_indices = @transform_3, window_bounds = array<i64: 1, 128>}, {transform_indices = @transform_4, window_bounds = array<i64: 1, 32, 128>}]} {
    %c0 = arith.constant 0 : index
    %c0_0 = arith.constant 0 : index
    %c0_1 = arith.constant 0 : index
    %0 = vector.load %arg1[%c0, %c0_0, %c0_1] : memref<1x18x64xf32, #tpu.memory_space<vmem>>, vector<1x16x64xf32>
    %1 = vector.shape_cast %0 : vector<1x16x64xf32> to vector<16x64xf32>
    %c0_2 = arith.constant 0 : index
    %c1 = arith.constant 1 : index
    %c0_3 = arith.constant 0 : index
    %2 = vector.load %arg1[%c0_2, %c1, %c0_3] : memref<1x18x64xf32, #tpu.memory_space<vmem>>, vector<1x16x64xf32>
    %3 = vector.shape_cast %2 : vector<1x16x64xf32> to vector<16x64xf32>
    %c0_4 = arith.constant 0 : index
    %c2 = arith.constant 2 : index
    %c0_5 = arith.constant 0 : index
    %4 = vector.load %arg1[%c0_4, %c2, %c0_5] : memref<1x18x64xf32, #tpu.memory_space<vmem>>, vector<1x16x64xf32>
    %5 = vector.shape_cast %4 : vector<1x16x64xf32> to vector<16x64xf32>
    %c0_6 = arith.constant 0 : index
    %c0_7 = arith.constant 0 : index
    %c0_8 = arith.constant 0 : index
    %c0_9 = arith.constant 0 : index
    %6 = vector.load %arg2[%c0_6, %c0_7, %c0_8, %c0_9] : memref<2x2x64x128xf32, #tpu.memory_space<vmem>>, vector<1x1x64x128xf32>
    %7 = vector.shape_cast %6 : vector<1x1x64x128xf32> to vector<64x128xf32>
    %cst = arith.constant dense<0.000000e+00> : vector<16x128xf32>
    %8 = tpu.matmul %1, %7, %cst {dimension_numbers = #tpu.dot_dimension_numbers<[1], [0], [0], [1], [0, 0, 1, 1], [], []>} : vector<16x64xf32>, vector<64x128xf32>, vector<16x128xf32> -> vector<16x128xf32>
    %c0_10 = arith.constant 0 : index
    %c1_11 = arith.constant 1 : index
    %c0_12 = arith.constant 0 : index
    %c0_13 = arith.constant 0 : index
    %9 = vector.load %arg2[%c0_10, %c1_11, %c0_12, %c0_13] : memref<2x2x64x128xf32, #tpu.memory_space<vmem>>, vector<1x1x64x128xf32>
    %10 = vector.shape_cast %9 : vector<1x1x64x128xf32> to vector<64x128xf32>
    %cst_14 = arith.constant dense<0.000000e+00> : vector<16x128xf32>
    %11 = tpu.matmul %3, %10, %cst_14 {dimension_numbers = #tpu.dot_dimension_numbers<[1], [0], [0], [1], [0, 0, 1, 1], [], []>} : vector<16x64xf32>, vector<64x128xf32>, vector<16x128xf32> -> vector<16x128xf32>
    %12 = arith.addf %8, %11 : vector<16x128xf32>
    %c1_15 = arith.constant 1 : index
    %c0_16 = arith.constant 0 : index
    %c0_17 = arith.constant 0 : index
    %c0_18 = arith.constant 0 : index
    %13 = vector.load %arg2[%c1_15, %c0_16, %c0_17, %c0_18] : memref<2x2x64x128xf32, #tpu.memory_space<vmem>>, vector<1x1x64x128xf32>
    %14 = vector.shape_cast %13 : vector<1x1x64x128xf32> to vector<64x128xf32>
    %cst_19 = arith.constant dense<0.000000e+00> : vector<16x128xf32>
    %15 = tpu.matmul %3, %14, %cst_19 {dimension_numbers = #tpu.dot_dimension_numbers<[1], [0], [0], [1], [0, 0, 1, 1], [], []>} : vector<16x64xf32>, vector<64x128xf32>, vector<16x128xf32> -> vector<16x128xf32>
    %c1_20 = arith.constant 1 : index
    %c1_21 = arith.constant 1 : index
    %c0_22 = arith.constant 0 : index
    %c0_23 = arith.constant 0 : index
    %16 = vector.load %arg2[%c1_20, %c1_21, %c0_22, %c0_23] : memref<2x2x64x128xf32, #tpu.memory_space<vmem>>, vector<1x1x64x128xf32>
    %17 = vector.shape_cast %16 : vector<1x1x64x128xf32> to vector<64x128xf32>
    %cst_24 = arith.constant dense<0.000000e+00> : vector<16x128xf32>
    %18 = tpu.matmul %5, %17, %cst_24 {dimension_numbers = #tpu.dot_dimension_numbers<[1], [0], [0], [1], [0, 0, 1, 1], [], []>} : vector<16x64xf32>, vector<64x128xf32>, vector<16x128xf32> -> vector<16x128xf32>
    %19 = arith.addf %15, %18 : vector<16x128xf32>
    %c0_25 = arith.constant 0 : index
    %c0_26 = arith.constant 0 : index
    %c0_27 = arith.constant 0 : index
    %20 = vector.load %arg3[%c0_25, %c0_26, %c0_27] : memref<2x32x16xf32, #tpu.memory_space<vmem>>, vector<1x32x16xf32>
    %21 = vector.shape_cast %20 : vector<1x32x16xf32> to vector<32x16xf32>
    %cst_28 = arith.constant dense<0.000000e+00> : vector<32x128xf32>
    %22 = tpu.matmul %21, %12, %cst_28 {dimension_numbers = #tpu.dot_dimension_numbers<[1], [0], [0], [1], [0, 0, 1, 1], [], []>} : vector<32x16xf32>, vector<16x128xf32>, vector<32x128xf32> -> vector<32x128xf32>
    %c1_29 = arith.constant 1 : index
    %c0_30 = arith.constant 0 : index
    %c0_31 = arith.constant 0 : index
    %23 = vector.load %arg3[%c1_29, %c0_30, %c0_31] : memref<2x32x16xf32, #tpu.memory_space<vmem>>, vector<1x32x16xf32>
    %24 = vector.shape_cast %23 : vector<1x32x16xf32> to vector<32x16xf32>
    %cst_32 = arith.constant dense<0.000000e+00> : vector<32x128xf32>
    %25 = tpu.matmul %24, %19, %cst_32 {dimension_numbers = #tpu.dot_dimension_numbers<[1], [0], [0], [1], [0, 0, 1, 1], [], []>} : vector<32x16xf32>, vector<16x128xf32>, vector<32x128xf32> -> vector<32x128xf32>
    %26 = arith.addf %22, %25 : vector<32x128xf32>
    %c0_33 = arith.constant 0 : index
    %c0_34 = arith.constant 0 : index
    %27 = vector.load %arg4[%c0_33, %c0_34] : memref<1x128xf32, #tpu.memory_space<vmem>>, vector<1x128xf32>
    %28 = vector.broadcast %27 : vector<1x128xf32> to vector<32x128xf32>
    %29 = arith.addf %26, %28 : vector<32x128xf32>
    %c0_35 = arith.constant 0 : index
    %c0_36 = arith.constant 0 : index
    %c0_37 = arith.constant 0 : index
    %30 = vector.load %arg5[%c0_35, %c0_36, %c0_37] : memref<1x32x128xf32, #tpu.memory_space<vmem>>, vector<1x32x128xf32>
    %31 = vector.shape_cast %30 : vector<1x32x128xf32> to vector<32x128xf32>
    %32 = vector.shape_cast %29 : vector<32x128xf32> to vector<1x32x128xf32>
    tpu.vector_store %arg5[%c0_35, %c0_36, %c0_37], %32 {strides = array<i32>} : memref<1x32x128xf32, #tpu.memory_space<vmem>>, vector<1x32x128xf32>,
    return
  }
  func.func @transform_0(%arg0: i32) -> (i32, i32, i32) {
    %c0_i32 = arith.constant 0 : i32
    %c0_i32_0 = arith.constant 0 : i32
    %c0_i32_1 = arith.constant 0 : i32
    return %arg0, %c0_i32, %c0_i32_0 : i32, i32, i32
  }
  func.func @transform_1(%arg0: i32) -> (i32, i32, i32, i32) {
    %c0_i32 = arith.constant 0 : i32
    %c0_i32_0 = arith.constant 0 : i32
    %c0_i32_1 = arith.constant 0 : i32
    %c0_i32_2 = arith.constant 0 : i32
    %c0_i32_3 = arith.constant 0 : i32
    return %c0_i32, %c0_i32_0, %c0_i32_1, %c0_i32_2 : i32, i32, i32, i32
  }
  func.func @transform_2(%arg0: i32) -> (i32, i32, i32) {
    %c0_i32 = arith.constant 0 : i32
    %c0_i32_0 = arith.constant 0 : i32
    %c0_i32_1 = arith.constant 0 : i32
    %c0_i32_2 = arith.constant 0 : i32
    return %c0_i32, %c0_i32_0, %c0_i32_1 : i32, i32, i32
  }
  func.func @transform_3(%arg0: i32) -> (i32, i32) {
    %c0_i32 = arith.constant 0 : i32
    %c0_i32_0 = arith.constant 0 : i32
    %c0_i32_1 = arith.constant 0 : i32
    return %c0_i32, %c0_i32_0 : i32, i32
  }
  func.func @transform_4(%arg0: i32) -> (i32, i32, i32) {
    %c0_i32 = arith.constant 0 : i32
    %c0_i32_0 = arith.constant 0 : i32
    %c0_i32_1 = arith.constant 0 : i32
    return %arg0, %c0_i32, %c0_i32_0 : i32, i32, i32
  }
}

</mosaic_0001>

<bundles_post_ra>
// kernel: tpu_custom_call.1
= control target key start
LH: loop header
LB: loop body
LE: loop exit
PB: predicated region body
PF: predicated region fallthrough
CT: control target
= control target key end

     0   :  { %9 = vsyncpa [#allocation3], 0  ;;  %s1512_s0 = inlined_call_operand.vmem [shape: f32[2,18,64], index: 0, kind: input, shape index: {}]   ;;  %s1513_s1 = inlined_call_operand.hbm [shape: f32[2,2,64,128], index: 1, kind: input, shape index: {}]   ;;  %s1514_s2 = inlined_call_operand.vmem [shape: f32[2,32,16], index: 2, kind: input, shape index: {}]   ;;  %s1515_s3 = inlined_call_operand.vmem [shape: f32[1,128], index: 3, kind: input, shape index: {}]   ;;  %s1516_s4 = inlined_call_operand.hbm [shape: f32[2,32,128], index: 4, kind: output, shape index: {}]  }
   0x1   :  { %10 = vsyncpa [#allocation4], 0 }
   0x2   :  { %12 = vsyncpa [#allocation4 + $0x1], 0  ;;  %s1323_s15 = smov 0   ;;  %s1325_s16 = smov 0  }
   0x3   :  { %s1327_s17 = smov 0   ;;  %s1329_s18 = smov 0  }
   0x4 LB: > { %s1344_s19 = sadd.s32 4294967295, %s1290_s18   ;;  %s878_s20 = sadd.s32 4294967294, %s1290_s18   ;;  %s1290_s18 = sphi %s1329_s18, %s1532_s18   ;;  %s1286_s17 = sphi %s1327_s17, %s1531_s17   ;;  %s1282_s16 = sphi %s1325_s16, %s1530_s16   ;;  %s1278_s15 = sphi %s1323_s15, %s1529_s15  }
   0x5   : > { %s1348_s21 = sadd.s32 1, %s1290_s18   ;;  %s114_s22 = sadd.s32 1, %s1286_s17 }
   0x6   : > { %s111_s23 = ssub.s32 %s1290_s18, %s1348_s21  ;;  %p124_p0 = scmp.ne.s32.totalorder %s1286_s17, %s1282_s16 }
   0x7   : > { %p112_p1 = scmp.eq.s32.totalorder %s111_s23, 0  ;;  %p125_p2 = scmp.eq.s32.totalorder %s1344_s19, 1 }
   0x8   : > { %p130_p3 = scmp.ne.s32.totalorder %s1282_s16, %s1278_s15  ;;  %p131_p4 = scmp.eq.s32.totalorder %s878_s20, 1 }
   0x9   : > { %s1359_s24 = scalar_select %p112_p1, %s1286_s17, %s114_s22  }
   0xa   : > { %p1361_p5 = por %p125_p2, %p124_p0  ;;  %p1365_p6 = por %p131_p4, %p130_p3 }
   0xb   : > { %p879_p7 = scmp.ge.s32.totalorder %s1290_s18, 1  ;;  %p138_p8 = scmp.lt.s32.totalorder %s1290_s18, 3 }
   0xc   : > { %s1520_s25 = scalar_select %p1361_p5, 1, 0 }
   0xd   : > { %s1521_s26 = scalar_select %p1365_p6, 1, 0 }
   0xe   : > { %p1517_p9 = scmp.eq.s32.totalorder %s1344_s19, 0  ;;  %p1372_p10 = pnand %p879_p7, %p138_p8 }
   0xf   : > { %s1292_s28 = smov [#allocation2]   ;;  %s1196_s7 = scalar_lea.hbm %s1513_s1, 4096 }
  0x10   : > { %s1522_s27 = scalar_select %p1372_p10, 1, 0 }
  0x11   : > { %s150_s29 = sshll.u32 %s1292_s28, 4  ;;  %p1148_p11 = pneg %p1372_p10  ;;  %s151_s29 = int_to_ptr.vmem [resolvable:$true] %s150_s29 }
  0x12   : > { %p1197_p13 = scmp.ne.s32.totalorder %s1513_s1, %s1196_s7  ;;  %p1203_p3 = scmp.lt.u32.totalorder %s1196_s7, %s1513_s1 }
  0x13   : > { %p1380_p12 = pnand %p1517_p9, %p1148_p11 }
  0x15   : > { %p1198_p0 = pneg %p1380_p12 }
  0x17   : > { %p1199_p1 = pnand %p1198_p0, %p1197_p13 }
  0x19   : > { %p1200_p2 = pneg %p1199_p1 }
  0x1b   : > { %p1205_p4 = pnand %p1203_p3, %p1200_p2 }
  0x1d   : > { %1208 = shalt.err (!%p1205_p4)
}
  0x1e   : > { %s1209_s12 = scalar_lea.vmem %s151_s29, 4096  ;;  %p1217_p9 = scmp.lt.s32.totalorder %s151_s29, %s151_s29 }
  0x1f   : > { %p1210_p7 = scmp.ne.s32.totalorder %s151_s29, %s1209_s12  ;;  %p1218_p6 = scmp.lt.s32.totalorder %s1209_s12, %s1209_s12 }
  0x21   : > { %p1212_p8 = pnand %p1210_p7, %p1198_p0  ;;  %p1219_p5 = por %p1218_p6, %p1217_p9 }
  0x23   : > { %p1213_p11 = pneg %p1212_p8 }
  0x25   : > { %p1220_p10 = pnand %p1219_p5, %p1213_p11 }
  0x27   : > { %1223 = shalt.err (!%p1220_p10)
}
  0x28   : > { %s1293_s13 = smov 128   ;;  %s1294_s14 = smov 8  }
  0x29   : > { %1151 = dma.hbm_to_vmem [thread:$0]  (!%p1380_p12), %s1513_s1, 4096, %s151_s29, [#allocation3], %s1293_s13, %s1293_s13, %s1294_s14  }
  0x2a   : > { %p1524_p13 = scmp.ne.s32.totalorder %s1522_s27, 0 }
  0x2b   : > { %p1525_p1 = scmp.eq.s32.totalorder (!%p1524_p13), %s1344_s19, 0 }
  0x2c   : > { %180 = sbr.rel (%p1524_p13) target bundleno = 543 (0x21f), region = 36 }
  0x33   : > { %1269 = dma.done.wait (%p1525_p1), [#allocation3], 4096   ;;  %p1526_p0 = pmov %p1525_p1 }
  0x34   : > { %p206_p5 = scmp.lt.s32.totalorder %s1344_s19, 1  ;;  %v226_v0 = vld [vmem:[#allocation2 + $0x40] sm:$0xff]  ;;  %v227_v1 = vld [vmem:[#allocation2 + $0x48] sm:$0xff]  ;;  %v228_v5 = vld [vmem:[#allocation2 + $0x50] sm:$0xff]  ;;  %vm234_vm0 = vcmask 523264   ;;  %vm580_vm1 = vcmask 130048  }
  0x35   : > { %1271 = vsyncadd (%p1526_p0), [#allocation3], 4294963200  ;;  %v407_v2 = vld [vmem:[#allocation2 + $0xc0] sm:$0xff]  ;;  %v1061_v3 = vpack.c.bf16 %v227_v1, %v226_v0  ;;  %v408_v4 = vld [vmem:[#allocation2 + $0xc8] sm:$0xff]  ;;  %s912_s10 = sshll.u32 %s1344_s19, 9  ;;  %p1527_p9 = scmp.ne.s32.totalorder %s1520_s25, 0 }
  0x36   : > { %s207_s23 = scalar_select %p206_p5, %s1344_s19, 1  ;;  %v229_v6 = vld [vmem:[#allocation2 + $0x58] sm:$0xff]  ;;  %v1093_v7 = vpack.c.bf16 %v408_v4, %v407_v2  ;;  %v409_v9 = vld [vmem:[#allocation2 + $0xd0] sm:$0xff]  ;;  %v230_v11 = vld [vmem:[#allocation2 + $0x60] sm:$0xff] }
  0x37   : > { %v1065_v8 = vpack.c.bf16 %v229_v6, %v228_v5  ;;  %v410_v10 = vld [vmem:[#allocation2 + $0xd8] sm:$0xff]  ;;  %1062 = vmatprep.subr.bf16.mxu0 %v1061_v3  ;;  %v231_v13 = vld [vmem:[#allocation2 + $0x68] sm:$0xff]  ;;  %v411_v14 = vld [vmem:[#allocation2 + $0xe0] sm:$0xff]  ;;  %s1469_s13 = scalar_lea.hbm %s1516_s4, %s912_s10  ;;  %s1295_s20 = smov [#allocation5]  }
  0x38   : > { %s1141_s28 = smul.u32 24, %s207_s23  ;;  %v1097_v12 = vpack.c.bf16 %v410_v10, %v409_v9  ;;  %v412_v15 = vld [vmem:[#allocation2 + $0xe8] sm:$0xff]  ;;  %1094 = vmatprep.subr.bf16.mxu1 %v1093_v7  ;;  %1064 = vmatpush3.bf16.msra.mxu0 %v1061_v3  ;;  %v1069_v16 = vpack.c.bf16 %v231_v13, %v230_v11  ;;  %v232_v19 = vld [vmem:[#allocation2 + $0x70] sm:$0xff]  ;;  %v233_v20 = vld [vmem:[#allocation2 + $0x78] sm:$0xff]  ;;  %s1228_s22 = sshll.u32 %s1295_s20, 4  ;;  %s1229_s22 = int_to_ptr.vmem [resolvable:$false] %s1228_s22 }
  0x39   : > { %1096 = vmatpush3.bf16.msra.mxu1 %v1093_v7  ;;  %1066 = vmatprep.subr.bf16.mxu0 %v1065_v8  ;;  %v1101_v18 = vpack.c.bf16 %v412_v15, %v411_v14  ;;  %v413_v22 = vld [vmem:[#allocation2 + $0xf0] sm:$0xff]  ;;  %v414_v23 = vld [vmem:[#allocation2 + $0xf8] sm:$0xff]  ;;  %v1073_v24 = vpack.c.bf16 %v233_v20, %v232_v19  ;;  %v217_v26 = vld [vmem:[#allocation2] sm:$0xff]  ;;  %s1230_s23 = scalar_lea.vmem %s1229_s22, 1024 }
  0x3a   : > { %s1411_s30 = scalar_lea.vmem %s1512_s0, %s1141_s28  ;;  %1098 = vmatprep.subr.bf16.mxu1 %v1097_v12  ;;  %v1105_v25 = vpack.c.bf16 %v414_v23, %v413_v22  ;;  %v218_v27 = vld [vmem:[#allocation2 + $0x8] sm:$0xff]  ;;  %v398_v28 = vld [vmem:[#allocation2 + $0x80] sm:$0xff]  ;;  %v219_v32 = vld [vmem:[#allocation2 + $0x10] sm:$0xff] }
  0x3b   : > { %v213_v17 = vld [vmem:[%s1411_s30 + $0x1] sm:$0xff]  ;;  %v399_v29 = vld [vmem:[#allocation2 + $0x88] sm:$0xff]  ;;  %v1077_v30 = vpack.c.bf16 %v218_v27, %v217_v26  ;;  %v214_v36 = vld [vmem:[%s1411_s30 + $0x9] sm:$0xff] }
  0x3c   : > { %981 = vmatprep.mubr.msk.f32.mxu0 %vm234_vm0, %v213_v17  ;;  %v215_v21 = vld [vmem:[%s1411_s30 + $0x2] sm:$0xff]  ;;  %1068 = vmatpush3.bf16.msra.mxu0 %v1065_v8  ;;  %v1109_v31 = vpack.c.bf16 %v399_v29, %v398_v28  ;;  %v216_v37 = vld [vmem:[%s1411_s30 + $0xa] sm:$0xff]  ;;  %v222_v41 = vld [vmem:[#allocation2 + $0x28] sm:$0xff] }
  0x3d   : > { %1019 = vmatprep.mubr.msk.f32.mxu1 %vm234_vm0, %v215_v21  ;;  %1100 = vmatpush3.bf16.msra.mxu1 %v1097_v12  ;;  %v220_v33 = vld [vmem:[#allocation2 + $0x18] sm:$0xff]  ;;  %v400_v34 = vld [vmem:[#allocation2 + $0x90] sm:$0xff]  ;;  %v221_v40 = vld [vmem:[#allocation2 + $0x20] sm:$0xff] }
  0x3e   : > { %1070 = vmatprep.subr.bf16.mxu0 %v1069_v16  ;;  %1102 = vmatprep.subr.bf16.mxu1 %v1101_v18  ;;  %v401_v35 = vld [vmem:[#allocation2 + $0x98] sm:$0xff]  ;;  %v1081_v38 = vpack.c.bf16 %v220_v33, %v219_v32  ;;  %v402_v42 = vld [vmem:[#allocation2 + $0xa0] sm:$0xff]  ;;  %v403_v43 = vld [vmem:[#allocation2 + $0xa8] sm:$0xff]  ;;  %v1085_v45 = vpack.c.bf16 %v222_v41, %v221_v40 }
  0x3f   : > { %v1113_v39 = vpack.c.bf16 %v401_v35, %v400_v34  ;;  %v211_v44 = vld [vmem:[%s1411_s30] sm:$0xff]  ;;  %v1117_v46 = vpack.c.bf16 %v403_v43, %v402_v42  ;;  %v224_v48 = vld [vmem:[#allocation2 + $0x38] sm:$0xff]  ;;  %v573_v0 = vld [vmem:[%s1514_s2 + $0x10] sm:$0xff] }
  0x40   : > { %1072 = vmatpush3.bf16.msra.mxu0 %v1069_v16  ;;  %v223_v47 = vld [vmem:[#allocation2 + $0x30] sm:$0xff]  ;;  %v405_v50 = vld [vmem:[#allocation2 + $0xb8] sm:$0xff]  ;;  %v896_v1 = vld [vmem:[%s1514_s2 + $0x30] sm:$0xff] }
  0x41   : > { %1104 = vmatpush3.bf16.msra.mxu1 %v1101_v18  ;;  %1074 = vmatprep.subr.bf16.mxu0 %v1073_v24  ;;  %v404_v49 = vld [vmem:[#allocation2 + $0xb0] sm:$0xff]  ;;  %v1089_v51 = vpack.c.bf16 %v224_v48, %v223_v47  ;;  %v212_v53 = vld [vmem:[%s1411_s30 + $0x8] sm:$0xff]  ;;  %v574_v2 = vld [vmem:[%s1514_s2 + $0x18] sm:$0xff]  ;;  %s203_s30 = sand.u32 1, %s1282_s16  }
  0x42   : > { %1106 = vmatprep.subr.bf16.mxu1 %v1105_v25  ;;  %v1121_v52 = vpack.c.bf16 %v405_v50, %v404_v49  ;;  %v894_v54 = vld [vmem:[%s1514_s2 + $0x20] sm:$0xff]  ;;  %v572_v62 = vld [vmem:[%s1514_s2 + $0x8] sm:$0xff]  ;;  %v897_v3 = vld [vmem:[%s1514_s2 + $0x38] sm:$0xff]  ;;  %s884_s5 = sshll.u32 %s203_s30, 5  ;;  %s1471_s19 = scalar_lea.sflag [#allocation4], %s203_s30 }
  0x43   : > { %v571_v55 = vld [vmem:[%s1514_s2] sm:$0xff]  ;;  %v895_v63 = vld [vmem:[%s1514_s2 + $0x28] sm:$0xff]  ;;  %s205_s8 = scalar_lea.vmem [#allocation5], %s884_s5 }
  0x44   : > { %1076 = vmatpush3.bf16.msra.mxu0 %v1073_v24  ;;  %v906_v6 = vld [vmem:[%s1515_s3] ss:$0 sm:$0xff]  ;;  %s804_s9 = sshll.u32 %s205_s8, 4  ;;  %s1464_s9 = int_to_ptr.vmem [resolvable:$true] %s804_s9 }
  0x45   : > { %1108 = vmatpush3.bf16.msra.mxu1 %v1105_v25  ;;  %1078 = vmatprep.subr.bf16.mxu0 %v1077_v30  ;;  %s1224_s14 = scalar_lea.vmem %s1464_s9, 512  ;;  %p1231_p2 = scmp.lt.s32.totalorder %s1464_s9, %s1229_s22 }
  0x46   : > { %1110 = vmatprep.subr.bf16.mxu1 %v1109_v31  ;;  %p1225_p6 = scmp.ne.s32.totalorder %s1464_s9, %s1224_s14  ;;  %p1232_p3 = scmp.lt.s32.totalorder %s1230_s23, %s1224_s14 }
  0x47   : > { %982 = vmatmul.mubr.msk.f32.vlgmr.msra.gmra.mrb[0].mxu0 %vm234_vm0, %v214_v36 }
  0x48   : > { %1080 = vmatpush3.bf16.msra.mxu0 %v1077_v30  ;;  %1020 = vmatmul.mubr.msk.f32.vlgmr.msra.gmra.mrb[0].mxu1 %vm234_vm0, %v216_v37  ;;  %p1226_p10 = pnand %p1225_p6, %p1527_p9  ;;  %p1233_p4 = por %p1232_p3, %p1231_p2 }
  0x49   : > { %1112 = vmatpush3.bf16.msra.mxu1 %v1109_v31  ;;  %1082 = vmatprep.subr.bf16.mxu0 %v1081_v38 }
  0x4a   : > { %1114 = vmatprep.subr.bf16.mxu1 %v1113_v39  ;;  %1000 = vmatprep.mubr.msk.f32.mxu0 %vm234_vm0, %v211_v44  ;;  %p1227_p12 = pneg %p1226_p10 }
  0x4b   : > { %1038 = vmatprep.mubr.msk.f32.mxu1 %vm234_vm0, %v213_v17 }
  0x4c   : > { %1084 = vmatpush3.bf16.msra.mxu0 %v1081_v38  ;;  %p1234_p7 = pnand %p1233_p4, %p1227_p12 }
  0x4d   : > { %1116 = vmatpush3.bf16.msra.mxu1 %v1113_v39  ;;  %1086 = vmatprep.subr.bf16.mxu0 %v1085_v45 }
  0x4e   : > { %1118 = vmatprep.subr.bf16.mxu1 %v1117_v46 }
  0x50   : > { %1088 = vmatpush3.bf16.msra.mxu0 %v1085_v45 }
  0x51   : > { %1120 = vmatpush3.bf16.msra.mxu1 %v1117_v46  ;;  %1090 = vmatprep.subr.bf16.mxu0 %v1089_v51 }
  0x52   : > { %1122 = vmatprep.subr.bf16.mxu1 %v1121_v52 }
  0x54   : > { %1092 = vmatpush3.bf16.msra.mxu0 %v1089_v51 }
  0x55   : > { %1124 = vmatpush3.bf16.msra.mxu1 %v1121_v52 }
  0x57   : > { %1001 = vmatmul.mubr.msk.f32.vlgmr.msra.gmra.mrb[0].mxu0 %vm234_vm0, %v212_v53 }
  0x58   : > { %1039 = vmatmul.mubr.msk.f32.vlgmr.msra.gmra.mrb[0].mxu1 %vm234_vm0, %v214_v36  ;;  %1055 = vmatprep.mubr.msk.f32.mxu0 %vm580_vm1, %v571_v55 }
  0x59   : > { %1045 = vmatprep.mubr.msk.f32.mxu1 %vm580_vm1, %v894_v54 }
 0x12a   : > { %v1002_v56 = vpop.f32.mrb[0].mxu0 }
 0x12b   : > { %v1040_v57 = vpop.f32.mrb[0].mxu1  ;;  %v388_v58 = vpop.f32.mrb[1].mxu0 }
 0x12c   : > { %v1129_v59 = vpack.c.bf16 %v1002_v56, %v388_v58  ;;  %v562_v60 = vpop.f32.mrb[1].mxu1 }
 0x12d   : > { %v1125_v61 = vpack.c.bf16 %v1040_v57, %v562_v60 }
 0x12e   : > { %1130 = vmatprep.subr.bf16.mxu0 %v1129_v59 }
 0x12f   : > { %1126 = vmatprep.subr.bf16.mxu1 %v1125_v61  ;;  %1132 = vmatpush3.bf16.msra.mxu0 %v1129_v59 }
 0x130   : > { %1128 = vmatpush3.bf16.msra.mxu1 %v1125_v61 }
 0x132   : > { %1056 = vmatmul.mubr.msk.f32.vlgmr.msra.gmra.mrb[2].mxu0 %vm580_vm1, %v572_v62 }
 0x133   : > { %1046 = vmatmul.mubr.msk.f32.vlgmr.msra.gmra.mrb[2].mxu1 %vm580_vm1, %v895_v63  ;;  %1058 = vmatprep.mubr.msk.f32.mxu0 %vm580_vm1, %v573_v0 }
 0x134   : > { %1048 = vmatprep.mubr.msk.f32.mxu1 %vm580_vm1, %v896_v1 }
 0x136   : > { %1059 = vmatmul.mubr.msk.f32.gmra.mrb[4].mxu0 %vm580_vm1, %v574_v2 }
 0x137   : > { %1049 = vmatmul.mubr.msk.f32.gmra.mrb[4].mxu1 %vm580_vm1, %v897_v3 }
 0x205   : > { %v1057_v4 = vpop.f32.mrb[2].mxu0 }
 0x206   : > { %v1047_v5 = vpop.f32.mrb[2].mxu1  ;;  %v756_v7 = vpop.f32.mrb[3].mxu0 }
 0x207   : > { %v762_v8 = vadd.f32 %v1057_v4, %v1047_v5  ;;  %v659_v9 = vpop.f32.mrb[3].mxu1 }
 0x208   : > { %v757_v10 = vadd.f32 %v756_v7, %v659_v9 }
 0x209   : > { %v783_v11 = vadd.f32 %v906_v6, %v762_v8  ;;  %v1060_v12 = vpop.f32.mrb[4].mxu0 }
 0x20a   : > { %v782_v13 = vadd.f32 %v906_v6, %v757_v10  ;;  %v1050_v14 = vpop.f32.mrb[4].mxu1  ;;  %v766_v15 = vpop.f32.mrb[5].mxu0 }
 0x20b   : > { %787 = vst [vmem:[%s205_s8 + $0x8] sm:$0xff] %v783_v11  ;;  %v772_v16 = vadd.f32 %v1060_v12, %v1050_v14  ;;  %v669_v17 = vpop.f32.mrb[5].mxu1 }
 0x20c   : > { %786 = vst [vmem:[%s205_s8] sm:$0xff] %v782_v13  ;;  %v767_v18 = vadd.f32 %v766_v15, %v669_v17 }
 0x20d   : > { %v785_v19 = vadd.f32 %v906_v6, %v772_v16 }
 0x20e   : > { %v784_v20 = vadd.f32 %v906_v6, %v767_v18 }
 0x20f   : > { %789 = vst [vmem:[%s205_s8 + $0x18] sm:$0xff] %v785_v19 }
 0x210   : > { %788 = vst [vmem:[%s205_s8 + $0x10] sm:$0xff] %v784_v20 }
 0x211   : > { %1237 = shalt.err (!%p1234_p7)
}
 0x212   : > { %s1238_s28 = scalar_lea.hbm %s1469_s13, 512  ;;  %s1242_s30 = scalar_lea.hbm %s1516_s4, 1024 }
 0x213   : > { %p1239_p8 = scmp.ne.s32.totalorder %s1469_s13, %s1238_s28  ;;  %p1243_p1 = scmp.lt.u32.totalorder %s1469_s13, %s1516_s4 }
 0x214   : > { %p1244_p0 = scmp.lt.u32.totalorder %s1242_s30, %s1238_s28  ;;  %p1246_p6 = scmp.lt.u32.totalorder %s1238_s28, %s1469_s13 }
 0x215   : > { %p1240_p11 = pnand %p1239_p8, %p1527_p9 }
 0x216   : > { %p1245_p5 = por %p1244_p0, %p1243_p1 }
 0x217   : > { %p1241_p13 = pneg %p1240_p11 }
 0x218   : > { %p1247_p10 = por %p1246_p6, %p1245_p5 }
 0x21a   : > { %p1248_p12 = pnand %p1247_p10, %p1241_p13 }
 0x21c   : > { %1251 = shalt.err (!%p1248_p12)
}
 0x21d   : > { %s1296_s7 = smov 128   ;;  %s1297_s8 = smov 8  }
 0x21e   : > { %1146 = dma.vmem_to_hbm [thread:$0]  (%p1527_p9), %s1464_s9, 512, %s1469_s13, %s1471_s19, %s1296_s7, %s1296_s7, %s1297_s8  }
 0x21f PF: > { %p1158_p2 = scmp.ge.s32.totalorder %s1290_s18, 2  ;;  %s819_s10 = sand.u32 1, %s1278_s15  }
 0x220   : > { %p1528_p3 = scmp.ne.s32.totalorder %s1521_s26, 0  ;;  %s820_s11 = scalar_lea.sflag [#allocation4], %s819_s10 }
 0x222   : > { %p1153_p4 = pnand %p1158_p2, %p1528_p3 }
 0x224   : > { %1273 = dma.done.wait (!%p1153_p4), %s820_s11, 512  }
 0x225   : > { %1275 = vsyncadd (!%p1153_p4), %s820_s11, 4294966784  ;;  %p15_p7 = scmp.ge.s32.totalorder %s1348_s21, 4   ;;  %s1529_s15 = smov %s1282_s16 }
 0x226   : > { %s1530_s16 = smov %s1286_s17  ;;  %s1531_s17 = smov %s1359_s24 }
 0x227   : > { %s1532_s18 = smov %s1348_s21  ;;  %17 = sbr.rel (!%p15_p7) target bundleno = 4 (0x4), region = 80 }
 0x22e   :  { %825 = vsyncpa [#allocation3], 1 }
 0x22f   :  { %827 = vsyncpa [#allocation3 + $0x1], 1 }
 0x230   :  { %828 = vsyncpa [#allocation4], 1 }
 0x231   :  { %830 = vsyncpa [#allocation4 + $0x1], 1 }

</bundles_post_ra>
